<compile_context>
chip_gen: v6e
topology: v6e:2x2x1
jax: 0.10.0
libtpu: 0.0.40
codegen_flags: <defaults>
</compile_context>

<pallas_src>
import functools

import jax
import jax.numpy as jnp
from jax.experimental import pallas as pl
from jax.experimental.pallas import tpu as pltpu

_LANE = 128
_SUBLANE = 8


def _round_up(x, m):
    return (x + m - 1) // m * m


# ----------------------------- Pallas kernel --------------------------------
def _dense_net_kernel(x_ref, w1_ref, b1_ref, w2_ref, b2_ref, w3_ref, b3_ref, o_ref):
    # Cast the raw f32 input tile to bf16 in-kernel (VPU); contraction over the
    # unpadded 875-wide K is handled by Mosaic's internal tiling.
    x = x_ref[...].astype(w1_ref.dtype)

    # Layer 1: (BN0-folded) weight-norm Linear -> ReLU
    h = jnp.dot(x, w1_ref[...], preferred_element_type=jnp.float32)
    h = jnp.maximum(h + b1_ref[...], 0.0)

    # Layer 2: (BN1-folded) weight-norm Linear -> ReLU
    h = jnp.dot(h.astype(w2_ref.dtype), w2_ref[...],
                preferred_element_type=jnp.float32)
    h = jnp.maximum(h + b2_ref[...], 0.0)

    # Layer 3: (BN2-folded) weight-norm Linear
    o = jnp.dot(h.astype(w3_ref.dtype), w3_ref[...],
                preferred_element_type=jnp.float32) + b3_ref[...]
    o_ref[...] = o.astype(o_ref.dtype)


# ------------------------- one-time parameter folding -------------------------
def _weight_norm_effective(v, g):
    # PyTorch weight_norm, dim=0: norm over all dims except dim 0 (per out-row).
    norm = jnp.sqrt(jnp.sum(v * v, axis=1, keepdims=True))
    return g * v / norm


def _bn_fold(gamma, beta, running_mean, running_var, eps=1e-5):
    scale = gamma / jnp.sqrt(running_var + eps)
    shift = beta - running_mean * scale
    return scale, shift


def prepare_params(params, weights_dtype=jnp.bfloat16):
    """Fold weight_norm + eval-mode BN into plain padded weights.

    Called once per parameter set (NOT per forward call). Returns bf16 weights
    (K dim of layer 1 left at 875; all output/lane dims padded to 128-multiples)
    and f32 biases, ready for the kernel.
    """
    w1 = _weight_norm_effective(params["v1"], params["g1"]).T  # [in, h]
    w2 = _weight_norm_effective(params["v2"], params["g2"]).T  # [h, h]
    w3 = _weight_norm_effective(params["v3"], params["g3"]).T  # [h, out]
    b1, b2, b3 = params["b1"], params["b2"], params["b3"]

    s0, t0 = _bn_fold(params["bn0_gamma"], params["bn0_beta"],
                      params["bn0_mean"], params["bn0_var"])
    s1, t1 = _bn_fold(params["bn1_gamma"], params["bn1_beta"],
                      params["bn1_mean"], params["bn1_var"])
    s2, t2 = _bn_fold(params["bn2_gamma"], params["bn2_beta"],
                      params["bn2_mean"], params["bn2_var"])

    # Fold each BN affine into the following Linear (weight-side transform):
    #   (x*s + t) @ W + b == x @ (s[:,None]*W) + (t @ W + b)
    w1f, b1f = s0[:, None] * w1, t0 @ w1 + b1
    w2f, b2f = s1[:, None] * w2, t1 @ w2 + b2
    w3f, b3f = s2[:, None] * w3, t2 @ w3 + b3

    in_f, h = w1f.shape
    out_f = w3f.shape[1]
    h_p, out_p = _round_up(h, _LANE), _round_up(out_f, _LANE)

    def pad2(a, r, c):
        return jnp.pad(a, ((0, r - a.shape[0]), (0, c - a.shape[1])))

    def pad1(a, c):
        return jnp.pad(a, (0, c - a.shape[0]))[None, :]

    return {
        "w1": pad2(w1f, in_f, h_p).astype(weights_dtype),   # [875, 128]
        "w2": pad2(w2f, h_p, h_p).astype(weights_dtype),    # [128, 128]
        "w3": pad2(w3f, h_p, out_p).astype(weights_dtype),  # [128, 256]
        "b1": pad1(b1f, h_p).astype(jnp.float32),
        "b2": pad1(b2f, h_p).astype(jnp.float32),
        "b3": pad1(b3f, out_p).astype(jnp.float32),
    }


def _cost_estimate(rows, in_f, h_p, out_p):
    flops = 2 * rows * (in_f * h_p + h_p * h_p + h_p * out_p)
    weight_bytes = 2 * (in_f * h_p + h_p * h_p + h_p * out_p) + 4 * (2 * h_p + out_p)
    bytes_accessed = rows * (in_f * 4 + out_p * 4) + weight_bytes
    return pl.CostEstimate(flops=flops, transcendentals=0,
                           bytes_accessed=bytes_accessed)


# ------------------------------ JAX wrapper ----------------------------------
@functools.partial(jax.jit, static_argnames=("block_b",))
def simple_dense_net_forward(x, folded, *, block_b=2048):
    """Returns the PADDED (rows_padded, 256) f32 output; slice in the consumer."""
    B, in_f = x.shape
    h_p = folded["w1"].shape[1]
    out_p = folded["w3"].shape[1]
    w_args = (folded["w1"], folded["b1"], folded["w2"], folded["b2"],
              folded["w3"], folded["b3"])

    if B <= block_b:
        # Single block: no grid, whole arrays resident in VMEM; x stays f32.
        b_p = _round_up(B, _SUBLANE)
        xp = x if b_p == B else jnp.pad(x, ((0, b_p - B), (0, 0)))
        out = pl.pallas_call(
            _dense_net_kernel,
            out_shape=jax.ShapeDtypeStruct((b_p, out_p), jnp.float32),
            in_specs=[pl.BlockSpec(memory_space=pltpu.MemorySpace.VMEM)
                      for _ in range(1 + len(w_args))],
            out_specs=pl.BlockSpec(memory_space=pltpu.MemorySpace.VMEM),
            cost_estimate=_cost_estimate(b_p, in_f, h_p, out_p),
        )(xp, *w_args)
    else:
        # Batch-tiled path: large tiles to amortize per-step overhead, parallel
        # grid over the batch so v7x can shard blocks across both TensorCores.
        tb = _round_up(block_b, 16)
        b_p = _round_up(B, tb)
        xp = x if b_p == B else jnp.pad(x, ((0, b_p - B), (0, 0)))
        out = pl.pallas_call(
            _dense_net_kernel,
            out_shape=jax.ShapeDtypeStruct((b_p, out_p), jnp.float32),
            grid=(b_p // tb,),
            in_specs=[
                pl.BlockSpec((tb, in_f), lambda i: (i, 0)),    # raw f32 x
                pl.BlockSpec((in_f, h_p), lambda i: (0, 0)),
                pl.BlockSpec((1, h_p), lambda i: (0, 0)),
                pl.BlockSpec((h_p, h_p), lambda i: (0, 0)),
                pl.BlockSpec((1, h_p), lambda i: (0, 0)),
                pl.BlockSpec((h_p, out_p), lambda i: (0, 0)),
                pl.BlockSpec((1, out_p), lambda i: (0, 0)),
            ],
            out_specs=pl.BlockSpec((tb, out_p), lambda i: (i, 0)),
            compiler_params=pltpu.CompilerParams(
                dimension_semantics=("parallel",),
                vmem_limit_bytes=48 * 1024 * 1024),
            cost_estimate=_cost_estimate(b_p, in_f, h_p, out_p),
        )(xp, *w_args)

    return out


# ------------------------- deterministic param init --------------------------
def init_params(key, in_features, hidden, out_features):
    ks = jax.random.split(key, 8)

    def linear_wn(k, fan_in, fan_out):
        kw, kb = jax.random.split(k)
        bound = 1.0 / jnp.sqrt(fan_in)
        v = jax.random.uniform(kw, (fan_out, fan_in), jnp.float32, -bound, bound)
        b = jax.random.uniform(kb, (fan_out,), jnp.float32, -bound, bound)
        g = jnp.sqrt(jnp.sum(v * v, axis=1, keepdims=True))  # PyTorch init: g = ||v||
        return v, g, b

    def bn(k, f):
        km, kv = jax.random.split(k)
        gamma = jnp.ones((f,), jnp.float32)
        beta = jnp.zeros((f,), jnp.float32)
        rm = 0.1 * jax.random.normal(km, (f,), jnp.float32)
        rv = 1.0 + 0.1 * jax.random.uniform(kv, (f,), jnp.float32)
        return gamma, beta, rm, rv

    v1, g1, b1 = linear_wn(ks[0], in_features, hidden)
    v2, g2, b2 = linear_wn(ks[1], hidden, hidden)
    v3, g3, b3 = linear_wn(ks[2], hidden, out_features)
    bn0 = bn(ks[3], in_features)
    bn1 = bn(ks[4], hidden)
    bn2 = bn(ks[5], hidden)

    return {
        "v1": v1, "g1": g1, "b1": b1,
        "v2": v2, "g2": g2, "b2": b2,
        "v3": v3, "g3": g3, "b3": b3,
        "bn0_gamma": bn0[0], "bn0_beta": bn0[1], "bn0_mean": bn0[2], "bn0_var": bn0[3],
        "bn1_gamma": bn1[0], "bn1_beta": bn1[1], "bn1_mean": bn1[2], "bn1_var": bn1[3],
        "bn2_gamma": bn2[0], "bn2_beta": bn2[1], "bn2_mean": bn2[2], "bn2_var": bn2[3],
    }


# ------------------------------ references -----------------------------------
def reference_forward(x, params):
    """Original module semantics (eval mode), pure f32 JAX:
    BN0 -> (Linear -> ReLU -> BN1) -> (Linear -> ReLU -> BN2) -> Linear."""
    def bn_eval(h, g, b, m, v, eps=1e-5):
        return (h - m) / jnp.sqrt(v + eps) * g + b

    h = bn_eval(x, params["bn0_gamma"], params["bn0_beta"],
                params["bn0_mean"], params["bn0_var"])
    w1 = _weight_norm_effective(params["v1"], params["g1"])
    h = jnp.maximum(h @ w1.T + params["b1"], 0.0)
    h = bn_eval(h, params["bn1_gamma"], params["bn1_beta"],
                params["bn1_mean"], params["bn1_var"])
    w2 = _weight_norm_effective(params["v2"], params["g2"])
    h = jnp.maximum(h @ w2.T + params["b2"], 0.0)
    h = bn_eval(h, params["bn2_gamma"], params["bn2_beta"],
                params["bn2_mean"], params["bn2_var"])
    w3 = _weight_norm_effective(params["v3"], params["g3"])
    return h @ w3.T + params["b3"]


def folded_reference_forward(x, folded):
    """Same folded bf16 weights / in-kernel cast semantics, plain XLA ops.
    Returns the padded (B, out_p) output."""
    h = jnp.dot(x.astype(folded["w1"].dtype), folded["w1"],
                preferred_element_type=jnp.float32) + folded["b1"]
    h = jnp.maximum(h, 0.0)
    h = jnp.dot(h.astype(folded["w2"].dtype), folded["w2"],
                preferred_element_type=jnp.float32) + folded["b2"]
    h = jnp.maximum(h, 0.0)
    return jnp.dot(h.astype(folded["w3"].dtype), folded["w3"],
                   preferred_element_type=jnp.float32) + folded["b3"]


if __name__ == "__main__":
    IN_FEATURES = 875   # module default
    OUT_FEATURES = 206  # module default
    HIDDEN = 32         # cfg.train.hidden_size
    BATCH = 8

    key = jax.random.PRNGKey(0)
    kx, kp, kx2 = jax.random.split(key, 3)
    x = jax.random.normal(kx, (BATCH, IN_FEATURES), jnp.float32)
    params = init_params(kp, IN_FEATURES, HIDDEN, OUT_FEATURES)

    # One-time parameter setup (weight_norm fold + BN fold + pad + bf16 cast),
    # hoisted out of the per-call path.
    folded = prepare_params(params, weights_dtype=jnp.bfloat16)
    folded = jax.tree_util.tree_map(jax.block_until_ready, folded)

    # Small batch: single-block, grid-free path. Output is padded; slice in the
    # consumer (outside the jitted kernel path).
    out_pad = jax.block_until_ready(simple_dense_net_forward(x, folded))
    out = out_pad[:BATCH, :OUT_FEATURES]
    assert out.shape == (BATCH, OUT_FEATURES)

    # Tight check vs a JAX reference using the exact same folded bf16 weights.
    ref_folded = folded_reference_forward(x, folded)[:BATCH, :OUT_FEATURES]
    assert jnp.allclose(out, ref_folded, atol=2e-3, rtol=2e-3), \
        "mismatch vs folded (bf16) reference"

    # Sanity check vs the original f32 eval-mode module semantics (bf16 tol).
    ref_f32 = reference_forward(x, params)
    assert jnp.allclose(out, ref_f32, atol=3e-2, rtol=3e-2), \
        "mismatch vs f32 module reference"

    # Large batch: exercises the batch-tiled path (2 x 2048-row blocks,
    # "parallel" grid -> both TensorCores on v7x).
    xb = jax.random.normal(kx2, (4096, IN_FEATURES), jnp.float32)
    outb_pad = jax.block_until_ready(
        simple_dense_net_forward(xb, folded, block_b=2048))
    outb = outb_pad[:, :OUT_FEATURES]
    assert outb.shape == (4096, OUT_FEATURES)
    refb = folded_reference_forward(xb, folded)[:, :OUT_FEATURES]
    assert jnp.allclose(outb, refb, atol=2e-3, rtol=2e-3), \
        "mismatch vs folded reference (tiled path)"

    print("KERNEL_OK")
</pallas_src>

<mosaic_0001>
module attributes {stable_mosaic.version = 11 : i64} {
  func.func @_dense_net_kernel(%arg0: memref<8x875xf32, #tpu.memory_space<vmem>>, %arg1: memref<875x128xbf16, #tpu.memory_space<vmem>>, %arg2: memref<1x128xf32, #tpu.memory_space<vmem>>, %arg3: memref<128x128xbf16, #tpu.memory_space<vmem>>, %arg4: memref<1x128xf32, #tpu.memory_space<vmem>>, %arg5: memref<128x256xbf16, #tpu.memory_space<vmem>>, %arg6: memref<1x256xf32, #tpu.memory_space<vmem>>, %arg7: memref<8x256xf32, #tpu.memory_space<vmem>>) attributes {dimension_semantics = [], scalar_prefetch = 0 : i64, scratch_operands = 0 : i64, tpu.core_type = #tpu.core_type<tc>} {
    %c0 = arith.constant 0 : index
    %c0_0 = arith.constant 0 : index
    %0 = vector.load %arg0[%c0, %c0_0] : memref<8x875xf32, #tpu.memory_space<vmem>>, vector<8x875xf32>
    %1 = arith.truncf %0 : vector<8x875xf32> to vector<8x875xbf16>
    %c0_1 = arith.constant 0 : index
    %c0_2 = arith.constant 0 : index
    %2 = vector.load %arg1[%c0_1, %c0_2] : memref<875x128xbf16, #tpu.memory_space<vmem>>, vector<875x128xbf16>
    %cst = arith.constant dense<0.000000e+00> : vector<8x128xf32>
    %3 = tpu.matmul %1, %2, %cst {dimension_numbers = #tpu.dot_dimension_numbers<[1], [0], [0], [1], [0, 0, 1, 1], [], []>} : vector<8x875xbf16>, vector<875x128xbf16>, vector<8x128xf32> -> vector<8x128xf32>
    %c0_3 = arith.constant 0 : index
    %c0_4 = arith.constant 0 : index
    %4 = vector.load %arg2[%c0_3, %c0_4] : memref<1x128xf32, #tpu.memory_space<vmem>>, vector<1x128xf32>
    %5 = vector.broadcast %4 : vector<1x128xf32> to vector<8x128xf32>
    %6 = arith.addf %3, %5 : vector<8x128xf32>
    %cst_5 = arith.constant 0.000000e+00 : f32
    %7 = vector.broadcast %cst_5 : f32 to vector<8x128xf32>
    %8 = arith.maximumf %6, %7 : vector<8x128xf32>
    %9 = arith.truncf %8 : vector<8x128xf32> to vector<8x128xbf16>
    %c0_6 = arith.constant 0 : index
    %c0_7 = arith.constant 0 : index
    %10 = vector.load %arg3[%c0_6, %c0_7] : memref<128x128xbf16, #tpu.memory_space<vmem>>, vector<128x128xbf16>
    %cst_8 = arith.constant dense<0.000000e+00> : vector<8x128xf32>
    %11 = tpu.matmul %9, %10, %cst_8 {dimension_numbers = #tpu.dot_dimension_numbers<[1], [0], [0], [1], [0, 0, 1, 1], [], []>} : vector<8x128xbf16>, vector<128x128xbf16>, vector<8x128xf32> -> vector<8x128xf32>
    %c0_9 = arith.constant 0 : index
    %c0_10 = arith.constant 0 : index
    %12 = vector.load %arg4[%c0_9, %c0_10] : memref<1x128xf32, #tpu.memory_space<vmem>>, vector<1x128xf32>
    %13 = vector.broadcast %12 : vector<1x128xf32> to vector<8x128xf32>
    %14 = arith.addf %11, %13 : vector<8x128xf32>
    %cst_11 = arith.constant 0.000000e+00 : f32
    %15 = vector.broadcast %cst_11 : f32 to vector<8x128xf32>
    %16 = arith.maximumf %14, %15 : vector<8x128xf32>
    %17 = arith.truncf %16 : vector<8x128xf32> to vector<8x128xbf16>
    %c0_12 = arith.constant 0 : index
    %c0_13 = arith.constant 0 : index
    %18 = vector.load %arg5[%c0_12, %c0_13] : memref<128x256xbf16, #tpu.memory_space<vmem>>, vector<128x256xbf16>
    %cst_14 = arith.constant dense<0.000000e+00> : vector<8x256xf32>
    %19 = tpu.matmul %17, %18, %cst_14 {dimension_numbers = #tpu.dot_dimension_numbers<[1], [0], [0], [1], [0, 0, 1, 1], [], []>} : vector<8x128xbf16>, vector<128x256xbf16>, vector<8x256xf32> -> vector<8x256xf32>
    %c0_15 = arith.constant 0 : index
    %c0_16 = arith.constant 0 : index
    %20 = vector.load %arg6[%c0_15, %c0_16] : memref<1x256xf32, #tpu.memory_space<vmem>>, vector<1x256xf32>
    %21 = vector.broadcast %20 : vector<1x256xf32> to vector<8x256xf32>
    %22 = arith.addf %19, %21 : vector<8x256xf32>
    %c0_17 = arith.constant 0 : index
    %c0_18 = arith.constant 0 : index
    %23 = vector.load %arg7[%c0_17, %c0_18] : memref<8x256xf32, #tpu.memory_space<vmem>>, vector<8x256xf32>
    tpu.vector_store %arg7[%c0_17, %c0_18], %22 {strides = array<i32>} : memref<8x256xf32, #tpu.memory_space<vmem>>, vector<8x256xf32>,
    return
  }
}

</mosaic_0001>

<bundles_post_ra>
// kernel: simple_dense_net_forward.1
= control target key start
LH: loop header
LB: loop body
LE: loop exit
PB: predicated region body
PF: predicated region fallthrough
CT: control target
= control target key end

     0   :  { %12 = vsyncpa [#allocation3], 0  ;;  %s1543_s0 = inlined_call_operand.hbm [shape: f32[8,875], index: 0, kind: input, shape index: {}]   ;;  %s1544_s1 = inlined_call_operand.hbm [shape: bf16[875,128], index: 1, kind: input, shape index: {}]   ;;  %s1545_s2 = inlined_call_operand.vmem [shape: f32[1,128], index: 2, kind: input, shape index: {}]   ;;  %s1546_s3 = inlined_call_operand.hbm [shape: bf16[128,128], index: 3, kind: input, shape index: {}]   ;;  %s1547_s4 = inlined_call_operand.hbm [shape: f32[1,128], index: 4, kind: input, shape index: {}]   ;;  %s1548_s5 = inlined_call_operand.hbm [shape: bf16[128,256], index: 5, kind: input, shape index: {}]   ;;  %s1549_s6 = inlined_call_operand.vmem [shape: f32[1,256], index: 6, kind: input, shape index: {}]   ;;  %s1550_s7 = inlined_call_operand.hbm [shape: f32[8,256], index: 7, kind: output, shape index: {}]  }
   0x1   :  { %13 = vsyncpa [#allocation6], 0 }
   0x2   :  { %14 = vsyncpa [#allocation9], 0 }
   0x3   :  { %15 = vsyncpa [#allocation4], 0  ;;  %s1438_s24 = smov [#allocation5]  }
   0x4   :  { %s31_s25 = sshll.u32 %s1438_s24, 4  ;;  %s32_s25 = int_to_ptr.vmem [resolvable:$true] %s31_s25 }
   0x5   :  { %s1318_s26 = scalar_lea.vmem %s32_s25, 7040  ;;  %p1323_p1 = scmp.lt.s32.totalorder %s32_s25, %s32_s25 }
   0x6   :  { %p1319_p0 = scmp.ne.s32.totalorder %s32_s25, %s1318_s26  ;;  %p1324_p2 = scmp.lt.s32.totalorder %s1318_s26, %s1318_s26 }
   0x8   :  { %p1325_p3 = por %p1324_p2, %p1323_p1 }
   0xa   :  { %p1326_p4 = pnand %p1325_p3, %p1319_p0 }
   0xc   :  { %1329 = shalt.err (!%p1326_p4)
}
   0xd   :  { %s1439_s27 = smov 64   ;;  %s1440_s28 = smov 4  }
   0xe   :  { %37 = dma.hbm_to_vmem [thread:$0]  %s1544_s1, 7040, %s32_s25, [#allocation6], %s1439_s27, %s1439_s27, %s1440_s28  }
   0xf   :  { %s1441_s8 = smov [#allocation8]   ;;  %s1442_s10 = smov [#allocation2]  }
  0x10   :  { %s58_s9 = sshll.u32 %s1441_s8, 4  ;;  %s22_s11 = sshll.u32 %s1442_s10, 4  ;;  %s59_s9 = int_to_ptr.vmem [resolvable:$true] %s58_s9  ;;  %s23_s11 = int_to_ptr.vmem [resolvable:$true] %s22_s11 }
  0x11   :  { %s1338_s12 = scalar_lea.vmem %s59_s9, 16  ;;  %s1342_s13 = scalar_lea.vmem %s59_s9, 32 }
  0x12   :  { %p1339_p5 = scmp.ne.s32.totalorder %s59_s9, %s1338_s12  ;;  %p1343_p6 = scmp.lt.s32.totalorder %s59_s9, %s59_s9 }
  0x13   :  { %p1344_p7 = scmp.lt.s32.totalorder %s1342_s13, %s1338_s12 }
  0x15   :  { %p1345_p8 = por %p1344_p7, %p1343_p6 }
  0x17   :  { %p1346_p9 = pnand %p1345_p8, %p1339_p5 }
  0x19   :  { %1349 = shalt.err (!%p1346_p9)
}
  0x1a   :  { %61 = dma.hbm_to_vmem [thread:$0]  %s1547_s4, 16, %s59_s9, [#allocation9]  }
  0x1b   :  { %s1358_s16 = scalar_lea.vmem %s23_s11, 896  ;;  %p1363_p11 = scmp.lt.s32.totalorder %s23_s11, %s23_s11 }
  0x1c   :  { %p1359_p10 = scmp.ne.s32.totalorder %s23_s11, %s1358_s16  ;;  %p1364_p12 = scmp.lt.s32.totalorder %s1358_s16, %s1358_s16 }
  0x1e   :  { %p1365_p13 = por %p1364_p12, %p1363_p11 }
  0x20   :  { %p1366_p0 = pnand %p1365_p13, %p1359_p10 }
  0x22   :  { %1369 = shalt.err (!%p1366_p0)
}
  0x23   :  { %25 = dma.hbm_to_vmem [thread:$0]  %s1543_s0, 896, %s23_s11, [#allocation3]  }
  0x24   :  { %s1443_s18 = smov [#allocation7]   ;;  %s1444_s20 = smov [#allocation10]  }
  0x25   :  { %s45_s19 = sshll.u32 %s1443_s18, 4  ;;  %s67_s21 = sshll.u32 %s1444_s20, 4  ;;  %s46_s19 = int_to_ptr.vmem [resolvable:$true] %s45_s19  ;;  %s68_s21 = int_to_ptr.vmem [resolvable:$true] %s67_s21 }
  0x26   :  { %s1378_s22 = scalar_lea.vmem %s46_s19, 1024  ;;  %p1383_p2 = scmp.lt.s32.totalorder %s46_s19, %s46_s19 }
  0x27   :  { %p1379_p1 = scmp.ne.s32.totalorder %s46_s19, %s1378_s22  ;;  %p1384_p3 = scmp.lt.s32.totalorder %s1378_s22, %s1378_s22 }
  0x29   :  { %p1385_p4 = por %p1384_p3, %p1383_p2 }
  0x2b   :  { %p1386_p5 = pnand %p1385_p4, %p1379_p1 }
  0x2d   :  { %1389 = shalt.err (!%p1386_p5)
}
  0x2e   :  { %51 = dma.hbm_to_vmem [thread:$0]  %s1546_s3, 1024, %s46_s19, [#allocation6], %s1439_s27, %s1439_s27, %s1440_s28  }
  0x2f   :  { %s1398_s0 = scalar_lea.vmem %s68_s21, 2048  ;;  %p1403_p7 = scmp.lt.s32.totalorder %s68_s21, %s68_s21 }
  0x30   :  { %p1399_p6 = scmp.ne.s32.totalorder %s68_s21, %s1398_s0  ;;  %p1404_p8 = scmp.lt.s32.totalorder %s1398_s0, %s1398_s0 }
  0x32   :  { %p1405_p9 = por %p1404_p8, %p1403_p7 }
  0x34   :  { %p1406_p10 = pnand %p1405_p9, %p1399_p6 }
  0x36   :  { %1409 = shalt.err (!%p1406_p10)
}
  0x37   :  { %s1445_s24 = smov 128   ;;  %s1446_s25 = smov 8  }
  0x38   :  { %73 = dma.hbm_to_vmem [thread:$0]  %s1548_s5, 2048, %s68_s21, [#allocation9], %s1445_s24, %s1445_s24, %s1446_s25  }
  0x39   :  { %1430 = dma.done.wait [#allocation3], 896  }
  0x3a   :  { %1431 = vsyncadd [#allocation3], 4294966400 }
  0x3b   :  { %1432 = dma.done.wait [#allocation6], 8064  }
  0x3c   :  { %1433 = vsyncadd [#allocation6], 4294959232 }
  0x3d   :  { %1434 = dma.done.wait [#allocation9], 2064  }
  0x3e   :  { %1435 = vsyncadd [#allocation9], 4294965232  ;;  %v1223_v0 = vld [vmem:[#allocation5 + $0x78] sm:$0xff]   ;;  %v1227_v4 = vld [vmem:[#allocation5 + $0x70] sm:$0xff]   ;;  %vm556_vm0 = vcmask 1044480   ;;  %vm557_vm1 = vcmask 1045504  }
  0x3f   :  { %v1224_v1 = vld [vmem:[#allocation5 + $0x38] sm:$0xff]   ;;  %1088 = vmatprep.subr.bf16.mxu0 %v1223_v0  ;;  %v1228_v5 = vld [vmem:[#allocation5 + $0x30] sm:$0xff]   ;;  %v1231_v8 = vld [vmem:[#allocation5 + $0x68] sm:$0xff]   ;;  %v1447_v40 = vmov 65535   ;;  %v1448_v45 = vmov 0.0   ;;  %vm1449_vm2 = vmmov 0  }
  0x40   :  { %v1225_v2 = vld [vmem:[#allocation5 + $0xf8] sm:$0xff]   ;;  %1089 = vmatpush3.bf16.msra.mxu0 %v1224_v1  ;;  %v1229_v6 = vld [vmem:[#allocation5 + $0xf0] sm:$0xff]   ;;  %v1232_v9 = vld [vmem:[#allocation5 + $0x28] sm:$0xff]   ;;  %v558_v41 = vsel %vm556_vm0, 4294967295, %v1447_v40  ;;  %vm552_vm3 = vcmask 875520   ;;  %s1451_s28 = smov [#allocation11]  }
  0x41   :  { %v1226_v3 = vld [vmem:[#allocation5 + $0xb8] sm:$0xff]   ;;  %1110 = vmatprep.subr.bf16.mxu1 %v1225_v2  ;;  %1090 = vmatprep.subr.bf16.mxu0 %v1227_v4  ;;  %v1230_v7 = vld [vmem:[#allocation5 + $0xb0] sm:$0xff]   ;;  %v1233_v10 = vld [vmem:[#allocation5 + $0xe8] sm:$0xff]   ;;  %v559_v47 = vsel %vm557_vm1, %v558_v41, 0  ;;  %s995_s30 = sshll.u32 %s1451_s28, 4  ;;  %s996_s30 = int_to_ptr.vmem [resolvable:$true] %s995_s30 }
  0x42   :  { %1111 = vmatpush3.bf16.msra.mxu1 %v1226_v3  ;;  %v1234_v11 = vld [vmem:[#allocation5 + $0xa8] sm:$0xff]   ;;  %v1235_v12 = vld [vmem:[#allocation5 + $0x60] sm:$0xff]   ;;  %v1239_v16 = vld [vmem:[#allocation5 + $0x58] sm:$0xff]   ;;  %s1410_s8 = scalar_lea.vmem %s996_s30, 256  ;;  %p1415_p12 = scmp.lt.s32.totalorder %s996_s30, %s996_s30 }
  0x43   :  { %1112 = vmatprep.subr.bf16.mxu1 %v1229_v6  ;;  %v1236_v13 = vld [vmem:[#allocation5 + $0x20] sm:$0xff]   ;;  %v1240_v17 = vld [vmem:[#allocation5 + $0x18] sm:$0xff]   ;;  %v1243_v20 = vld [vmem:[#allocation5 + $0x50] sm:$0xff]   ;;  %p1411_p11 = scmp.ne.s32.totalorder %s996_s30, %s1410_s8  ;;  %p1416_p13 = scmp.lt.s32.totalorder %s1410_s8, %s1410_s8 }
  0x44   :  { %1091 = vmatpush3.bf16.msra.mxu0 %v1228_v5  ;;  %v1237_v14 = vld [vmem:[#allocation5 + $0xe0] sm:$0xff]   ;;  %v1241_v18 = vld [vmem:[#allocation5 + $0xd8] sm:$0xff]   ;;  %v1244_v21 = vld [vmem:[#allocation5 + $0x10] sm:$0xff]  }
  0x45   :  { %1092 = vmatprep.subr.bf16.mxu0 %v1231_v8  ;;  %v1238_v15 = vld [vmem:[#allocation5 + $0xa0] sm:$0xff]   ;;  %v1242_v19 = vld [vmem:[#allocation5 + $0x98] sm:$0xff]   ;;  %v1245_v22 = vld [vmem:[#allocation5 + $0xd0] sm:$0xff]   ;;  %p1417_p0 = por %p1416_p13, %p1415_p12 }
  0x46   :  { %1113 = vmatpush3.bf16.msra.mxu1 %v1230_v7  ;;  %v1246_v23 = vld [vmem:[#allocation5 + $0x90] sm:$0xff]   ;;  %v1247_v24 = vld [vmem:[#allocation5 + $0x48] sm:$0xff]   ;;  %v1251_v28 = vld [vmem:[#allocation5 + $0x40] sm:$0xff]  }
  0x47   :  { %1114 = vmatprep.subr.bf16.mxu1 %v1233_v10  ;;  %v1248_v25 = vld [vmem:[#allocation5 + $0x8] sm:$0xff]   ;;  %v1252_v29 = vld [vmem:[#allocation5] sm:$0xff]   ;;  %v93_v31 = vld [vmem:[#allocation2 + $0x8] sm:$0xff]  ;;  %p1418_p1 = pnand %p1417_p0, %p1411_p11 }
  0x48   :  { %1093 = vmatpush3.bf16.msra.mxu0 %v1232_v9  ;;  %v1249_v26 = vld [vmem:[#allocation5 + $0xc8] sm:$0xff]   ;;  %v1253_v30 = vld [vmem:[#allocation5 + $0xc0] sm:$0xff]   ;;  %v100_v32 = vpack.c.bf16 %v93_v31, %v93_v31  ;;  %v1255_v36 = vld [vmem:[#allocation5 + $0x178] sm:$0xff]  }
  0x49   :  { %1094 = vmatprep.subr.bf16.mxu0 %v1235_v12  ;;  %v1250_v27 = vld [vmem:[#allocation5 + $0x88] sm:$0xff]   ;;  %v1254_v33 = vld [vmem:[#allocation5 + $0x80] sm:$0xff]   ;;  %v1256_v39 = vld [vmem:[#allocation5 + $0x138] sm:$0xff]  }
  0x4a   :  { %1115 = vmatpush3.bf16.msra.mxu1 %v1234_v11  ;;  %v92_v34 = vld [vmem:[#allocation2] sm:$0xff]  ;;  %v95_v37 = vld [vmem:[#allocation2 + $0x18] sm:$0xff]  ;;  %595 = vmatprep.mubr.bf16.mxu0 %v100_v32  ;;  %v94_v42 = vld [vmem:[#allocation2 + $0x10] sm:$0xff] }
  0x4b   :  { %1116 = vmatprep.subr.bf16.mxu1 %v1237_v14  ;;  %v99_v35 = vpack.c.bf16 %v92_v34, %v92_v34  ;;  %v102_v38 = vpack.c.bf16 %v95_v37, %v95_v37  ;;  %v101_v43 = vpack.c.bf16 %v94_v42, %v94_v42  ;;  %v1257_v44 = vld [vmem:[#allocation5 + $0x170] sm:$0xff]   ;;  %v1260_v49 = vld [vmem:[#allocation5 + $0x168] sm:$0xff]   ;;  %v1263_v53 = vld [vmem:[#allocation5 + $0x160] sm:$0xff]  }
  0x4c   :  { %1095 = vmatpush3.bf16.msra.mxu0 %v1236_v13  ;;  %v1258_v46 = vld [vmem:[#allocation5 + $0x130] sm:$0xff]   ;;  %v1261_v51 = vld [vmem:[#allocation5 + $0x128] sm:$0xff]   ;;  %v1264_v54 = vld [vmem:[#allocation5 + $0x120] sm:$0xff]  }
  0x4d   :  { %1096 = vmatprep.subr.bf16.mxu0 %v1239_v16  ;;  %635 = vmatprep.mubr.bf16.mxu1 %v102_v38  ;;  %v1259_v48 = vld [vmem:[#allocation5 + $0x1b0] sm:$0x3f]   ;;  %v1262_v52 = vld [vmem:[#allocation5 + $0x1a8] sm:$0xff]   ;;  %v1266_v55 = vld [vmem:[#allocation5 + $0x158] sm:$0xff]  }
  0x4e   :  { %1117 = vmatpush3.bf16.msra.mxu1 %v1238_v15  ;;  %v561_v50 = vand.u32 %v1259_v48, %v559_v47  ;;  %v1265_v56 = vld [vmem:[#allocation5 + $0x1a0] sm:$0xff]   ;;  %v1267_v57 = vld [vmem:[#allocation5 + $0x118] sm:$0xff]   ;;  %v1269_v58 = vld [vmem:[#allocation5 + $0x150] sm:$0xff]  }
  0x4f   :  { %1118 = vmatprep.subr.bf16.mxu1 %v1241_v18  ;;  %v1268_v59 = vld [vmem:[#allocation5 + $0x198] sm:$0xff]   ;;  %v1270_v60 = vld [vmem:[#allocation5 + $0x110] sm:$0xff]   ;;  %v1272_v61 = vld [vmem:[#allocation5 + $0x148] sm:$0xff]  }
  0x50   :  { %1097 = vmatpush3.bf16.msra.mxu0 %v1240_v17  ;;  %v1271_v62 = vld [vmem:[#allocation5 + $0x190] sm:$0xff]   ;;  %v1273_v63 = vld [vmem:[#allocation5 + $0x108] sm:$0xff]   ;;  %v1275_v2 = vld [vmem:[#allocation5 + $0x140] sm:$0xff]  }
  0x51   :  { %1098 = vmatprep.subr.bf16.mxu0 %v1243_v20  ;;  %v1274_v0 = vld [vmem:[#allocation5 + $0x188] sm:$0xff]   ;;  %v97_v1 = vld [vmem:[#allocation2 + $0x28] sm:$0xff]  ;;  %v1276_v4 = vld [vmem:[#allocation5 + $0x100] sm:$0xff]  }
  0x52   :  { %1119 = vmatpush3.bf16.msra.mxu1 %v1242_v19  ;;  %v104_v3 = vpack.c.bf16 %v97_v1, %v97_v1  ;;  %v96_v5 = vld [vmem:[#allocation2 + $0x20] sm:$0xff]  ;;  %v1277_v6 = vld [vmem:[#allocation5 + $0x180] sm:$0xff]   ;;  %v98_v7 = vld [vmem:[#allocation2 + $0x30] sm:$0xff] }
  0x53   :  { %1120 = vmatprep.subr.bf16.mxu1 %v1245_v22  ;;  %v103_v8 = vpack.c.bf16 %v96_v5, %v96_v5  ;;  %v105_v9 = vpack.c.bf16 %v98_v7, %v98_v7  ;;  %v1278_v10 = vld [vmem:[#allocation7 + $0x38] sm:$0xff]   ;;  %v1279_v11 = vld [vmem:[#allocation7 + $0x30] sm:$0xff]   ;;  %v1280_v12 = vld [vmem:[#allocation7 + $0x28] sm:$0xff]   ;;  %v856_v5 = vlaneseq }
  0x54   :  { %1099 = vmatpush3.bf16.msra.mxu0 %v1244_v21  ;;  %v1281_v13 = vld [vmem:[#allocation7 + $0x20] sm:$0xff]   ;;  %v1282_v14 = vld [vmem:[#allocation7 + $0x18] sm:$0xff]   ;;  %v1283_v15 = vld [vmem:[#allocation7 + $0x10] sm:$0xff]  }
  0x55   :  { %1100 = vmatprep.subr.bf16.mxu0 %v1247_v24  ;;  %v1284_v16 = vld [vmem:[#allocation7 + $0x8] sm:$0xff]   ;;  %v1285_v17 = vld [vmem:[#allocation7] sm:$0xff]   ;;  %v1286_v18 = vld [vmem:[#allocation10 + $0x70] ss:$8 sps:$4 sm:$0xff]  }
  0x56   :  { %1121 = vmatpush3.bf16.msra.mxu1 %v1246_v23  ;;  %v1288_v19 = vld [vmem:[#allocation10 + $0x74] ss:$8 sps:$4 sm:$0xff]   ;;  %v1291_v20 = vld [vmem:[#allocation10 + $0x64] ss:$8 sps:$4 sm:$0xff]   ;;  %v1289_v21 = vld [vmem:[#allocation10 + $0x60] ss:$8 sps:$4 sm:$0xff]  }
  0x57   :  { %1122 = vmatprep.subr.bf16.mxu1 %v1249_v26  ;;  %v1294_v22 = vld [vmem:[#allocation10 + $0x54] ss:$8 sps:$4 sm:$0xff]   ;;  %v1292_v23 = vld [vmem:[#allocation10 + $0x50] ss:$8 sps:$4 sm:$0xff]   ;;  %v1297_v24 = vld [vmem:[#allocation10 + $0x44] ss:$8 sps:$4 sm:$0xff]  }
  0x58   :  { %1101 = vmatpush3.bf16.msra.mxu0 %v1248_v25  ;;  %v1295_v25 = vld [vmem:[#allocation10 + $0x40] ss:$8 sps:$4 sm:$0xff]   ;;  %v1300_v26 = vld [vmem:[#allocation10 + $0x34] ss:$8 sps:$4 sm:$0xff]   ;;  %v1304_v31 = vld [vmem:[#allocation10 + $0x10] ss:$8 sps:$4 sm:$0xff]  }
  0x59   :  { %1102 = vmatprep.subr.bf16.mxu0 %v1251_v28  ;;  %v1303_v28 = vld [vmem:[#allocation10 + $0x24] ss:$8 sps:$4 sm:$0xff]  }
  0x5a   :  { %1123 = vmatpush3.bf16.msra.mxu1 %v1250_v27  ;;  %v1298_v27 = vld [vmem:[#allocation10 + $0x30] ss:$8 sps:$4 sm:$0xff]   ;;  %v1006_v41 = vld [vmem:[%s1545_s2] ss:$0 sm:$0xff] }
  0x5b   :  { %1124 = vmatprep.subr.bf16.mxu1 %v1253_v30  ;;  %v1306_v30 = vld [vmem:[#allocation10 + $0x14] ss:$8 sps:$4 sm:$0xff]  }
  0x5c   :  { %1103 = vmatpush3.bf16.msra.mxu0 %v1252_v29  ;;  %v1301_v29 = vld [vmem:[#allocation10 + $0x20] ss:$8 sps:$4 sm:$0xff]  }
  0x5d   :  { %1132 = vmatprep.subr.bf16.mxu0 %v1255_v36 }
  0x5e   :  { %1125 = vmatpush3.bf16.msra.mxu1 %v1254_v33 }
  0x5f   :  { %596 = vmatmul.mubr.bf16.vlgmr.msra.gmra.mxu0 %v99_v35  ;;  %1171 = vmatprep.subr.bf16.mxu1 %v1448_v45 }
  0x60   :  { %1133 = vmatpush3.bf16.msra.mxu0 %v1256_v39  ;;  %675 = vmatprep.mubr.bf16.mxu0 %v104_v3 }
  0x61   :  { %636 = vmatmul.mubr.bf16.vlgmr.msra.gmra.mxu1 %v101_v43  ;;  %1134 = vmatprep.subr.bf16.mxu0 %v1257_v44 }
  0x62   :  { %1185 = vmatprep.mubr.msk.bf16.mxu1 %vm1449_vm2, %v1448_v45  ;;  %1172 = vmatpush3.bf16.msra.mxu1 %v561_v50 }
  0x63   :  { %1173 = vmatprep.subr.bf16.mxu1 %v1448_v45 }
  0x64   :  { %1135 = vmatpush3.bf16.msra.mxu0 %v1258_v46 }
  0x65   :  { %1136 = vmatprep.subr.bf16.mxu0 %v1260_v49 }
  0x66   :  { %1174 = vmatpush3.bf16.msra.mxu1 %v1262_v52 }
  0x67   :  { %1175 = vmatprep.subr.bf16.mxu1 %v1448_v45 }
  0x68   :  { %1137 = vmatpush3.bf16.msra.mxu0 %v1261_v51 }
  0x69   :  { %1138 = vmatprep.subr.bf16.mxu0 %v1263_v53 }
  0x6a   :  { %1176 = vmatpush3.bf16.msra.mxu1 %v1265_v56 }
  0x6b   :  { %1177 = vmatprep.subr.bf16.mxu1 %v1448_v45 }
  0x6c   :  { %1139 = vmatpush3.bf16.msra.mxu0 %v1264_v54 }
  0x6d   :  { %1140 = vmatprep.subr.bf16.mxu0 %v1266_v55 }
  0x6e   :  { %1178 = vmatpush3.bf16.msra.mxu1 %v1268_v59  ;;  %v1307_v59 = vld [vmem:[#allocation10] ss:$8 sps:$4 sm:$0xff]  }
  0x6f   :  { %1179 = vmatprep.subr.bf16.mxu1 %v1448_v45 }
  0x70   :  { %1141 = vmatpush3.bf16.msra.mxu0 %v1267_v57 }
  0x71   :  { %1142 = vmatprep.subr.bf16.mxu0 %v1269_v58  ;;  %v1309_v58 = vld [vmem:[#allocation10 + $0x4] ss:$8 sps:$4 sm:$0xff]  }
  0x72   :  { %1180 = vmatpush3.bf16.msra.mxu1 %v1271_v62 }
  0x73   :  { %1181 = vmatprep.subr.bf16.mxu1 %v1448_v45 }
  0x74   :  { %1143 = vmatpush3.bf16.msra.mxu0 %v1270_v60  ;;  %v1450_v60 = vmov 0  }
  0x75   :  { %1144 = vmatprep.subr.bf16.mxu0 %v1272_v61  ;;  %v1063_v61 = vld [vmem:[#allocation8] ss:$0 sm:$0xff] }
  0x76   :  { %1182 = vmatpush3.bf16.msra.mxu1 %v1274_v0 }
  0x77   :  { %1183 = vmatprep.subr.bf16.mxu1 %v1448_v45 }
  0x78   :  { %1145 = vmatpush3.bf16.msra.mxu0 %v1273_v63 }
  0x79   :  { %1146 = vmatprep.subr.bf16.mxu0 %v1275_v2 }
  0x7a   :  { %1184 = vmatpush3.bf16.msra.mxu1 %v1277_v6  ;;  %v857_v6 = vshrl.u32 %v856_v5, 7 }
  0x7b   :  { %1189 = vmatprep.subr.bf16.mxu1 %v1448_v45 }
  0x7c   :  { %1147 = vmatpush3.bf16.msra.mxu0 %v1276_v4  ;;  %v858_v7 = vsub.s32 0, %v857_v6 }
  0x7d   :  { %1186 = vmatmul.mubr.msk.bf16.vlgmr.msra.gmra.mxu1 %vm552_vm3, %v105_v9  ;;  %946 = vmatprep.subr.bf16.mxu0 %v1288_v19  ;;  %v862_v9 = vsub.s32 1, %v857_v6 }
  0x7e   :  { %1205 = vmatprep.mubr.msk.bf16.mxu1 %vm1449_vm2, %v1448_v45  ;;  %1190 = vmatpush3.bf16.msra.mxu1 %v1278_v10 }
  0x7f   :  { %676 = vmatmul.mubr.bf16.vlgmr.msra.gmra.mxu0 %v103_v8  ;;  %1191 = vmatprep.subr.bf16.mxu1 %v1448_v45  ;;  %v854_v8 = vld [vmem:[%s1549_s6] sm:$0x3] }
  0x80   :  { %947 = vmatpush1.bf16.msra.mxu0 %v1286_v18  ;;  %978 = vmatprep.mubr.bf16.mxu0 %v1450_v60  ;;  %v859_v10 = vrot.slane %v854_v8, %v858_v7 }
  0x81   :  { %948 = vmatprep.subr.bf16.mxu0 %v1291_v20 }
  0x82   :  { %1192 = vmatpush3.bf16.msra.mxu1 %v1279_v11  ;;  %v863_v11 = vrot.slane %v854_v8, %v862_v9 }
  0x83   :  { %1193 = vmatprep.subr.bf16.mxu1 %v1448_v45 }
  0x84   :  { %949 = vmatpush1.bf16.msra.mxu0 %v1289_v21 }
  0x85   :  { %950 = vmatprep.subr.bf16.mxu0 %v1294_v22 }
  0x86   :  { %1194 = vmatpush3.bf16.msra.mxu1 %v1280_v12 }
  0x87   :  { %1195 = vmatprep.subr.bf16.mxu1 %v1448_v45 }
  0x88   :  { %951 = vmatpush1.bf16.msra.mxu0 %v1292_v23 }
  0x89   :  { %952 = vmatprep.subr.bf16.mxu0 %v1297_v24 }
  0x8a   :  { %1196 = vmatpush3.bf16.msra.mxu1 %v1281_v13 }
  0x8b   :  { %1197 = vmatprep.subr.bf16.mxu1 %v1448_v45 }
  0x8c   :  { %953 = vmatpush1.bf16.msra.mxu0 %v1295_v25 }
  0x8d   :  { %954 = vmatprep.subr.bf16.mxu0 %v1300_v26 }
  0x8e   :  { %1198 = vmatpush3.bf16.msra.mxu1 %v1282_v14 }
  0x8f   :  { %1199 = vmatprep.subr.bf16.mxu1 %v1448_v45 }
  0x90   :  { %955 = vmatpush1.bf16.msra.mxu0 %v1298_v27 }
  0x91   :  { %956 = vmatprep.subr.bf16.mxu0 %v1303_v28 }
  0x92   :  { %1200 = vmatpush3.bf16.msra.mxu1 %v1283_v15 }
  0x93   :  { %1201 = vmatprep.subr.bf16.mxu1 %v1448_v45 }
  0x94   :  { %957 = vmatpush1.bf16.msra.mxu0 %v1301_v29 }
  0x95   :  { %958 = vmatprep.subr.bf16.mxu0 %v1306_v30 }
  0x96   :  { %1202 = vmatpush3.bf16.msra.mxu1 %v1284_v16 }
  0x97   :  { %1203 = vmatprep.subr.bf16.mxu1 %v1448_v45 }
  0x98   :  { %959 = vmatpush1.bf16.msra.mxu0 %v1304_v31 }
  0x99   :  { %960 = vmatprep.subr.bf16.mxu0 %v1309_v58 }
  0x9a   :  { %1204 = vmatpush3.bf16.msra.mxu1 %v1285_v17 }
  0x9c   :  { %961 = vmatpush1.bf16.msra.mxu0 %v1307_v59 }
 0x11f   :  { %v1104_v32 = vpop.f32.mrf.mxu0 }
 0x121   :  { %v1105_v33 = vpop.f32.mrf.mxu0  ;;  %v1126_v34 = vpop.f32.mrf.mxu1 }
 0x122   :  { %v1106_v40 = vadd.f32 %v1105_v33, %v1104_v32 }
 0x123   :  { %v1107_v35 = vpop.f32.mrf.mxu0  ;;  %v1127_v36 = vpop.f32.mrf.mxu1 }
 0x124   :  { %v598_v42 = vadd.f32 %v1106_v40, %v1006_v41  ;;  %v1128_v43 = vadd.f32 %v1127_v36, %v1126_v34 }
 0x125   :  { %v1108_v37 = vpop.f32.mrf.mxu0  ;;  %v1129_v38 = vpop.f32.mrf.mxu1 }
 0x126   :  { %v638_v47 = vadd.f32 %v1128_v43, %v598_v42 }
 0x127   :  { %v1130_v39 = vpop.f32.mrf.mxu1 }
 0x13d   :  { %v717_v45 = vpop.f32.mrf.mxu1 }
 0x13f   :  { %v1148_v44 = vpop.f32.mrf.mxu0  ;;  %v1187_v49 = vpop.f32.mrf.mxu1 }
 0x141   :  { %v1149_v46 = vpop.f32.mrf.mxu0  ;;  %v720_v52 = vpop.f32.mrf.mxu1 }
 0x142   :  { %v1150_v48 = vadd.f32 %v1149_v46, %v1148_v44 }
 0x143   :  { %v1151_v50 = vpop.f32.mrf.mxu0  ;;  %v1188_v55 = vpop.f32.mrf.mxu1 }
 0x144   :  { %v678_v51 = vadd.f32 %v1150_v48, %v638_v47 }
 0x145   :  { %v1152_v53 = vpop.f32.mrf.mxu0 }
 0x146   :  { %v718_v54 = vadd.f32 %v717_v45, %v678_v51 }
 0x148   :  { %v723_v56 = vmax.f32 %v718_v54, 0.0 }
 0x14a   :  { %v724_v57 = vpack.c.bf16 %v723_v56, %v723_v56 }
 0x14c   :  { %1206 = vmatmul.mubr.bf16.vlgmr.msra.gmra.mxu1 %v724_v57 }
 0x20c   :  { %v830_v62 = vpop.f32.mrf.mxu1 }
 0x20d   :  { %v831_v63 = vadd.f32 %v1063_v61, %v830_v62 }
 0x20e   :  { %v1207_v0 = vpop.f32.mrf.mxu1 }
 0x20f   :  { %v836_v1 = vmax.f32 %v831_v63, 0.0 }
 0x210   :  { %v833_v2 = vpop.f32.mrf.mxu1 }
 0x211   :  { %v837_v3 = vpack.c.bf16 %v836_v1, %v836_v1 }
 0x212   :  { %v1208_v4 = vpop.f32.mrf.mxu1 }
 0x213   :  { %979 = vmatmul.mubr.bf16.vlgmr.msra.gmra.mxu0 %v837_v3 }
 0x2d3   :  { %v980_v12 = vpop.f32.mrf.mxu0 }
 0x2d4   :  { %v981_v13 = vadd.f32 %v980_v12, %v859_v10 }
 0x2d5   :  { %v982_v14 = vpop.f32.mrf.mxu0 }
 0x2d6   :  { %987 = vst [vmem:[#allocation11] sm:$0xff] %v981_v13  ;;  %v983_v15 = vadd.f32 %v982_v14, %v863_v11 }
 0x2d7   :  { %v984_v16 = vpop.f32.mrf.mxu0 }
 0x2d8   :  { %988 = vst [vmem:[#allocation11 + $0x8] sm:$0xff] %v983_v15 }
 0x2d9   :  { %v985_v17 = vpop.f32.mrf.mxu0 }
 0x2da   :  { %1421 = shalt.err (!%p1418_p1)
}
 0x2db   :  { %998 = dma.vmem_to_hbm [thread:$0]  %s996_s30, 256, %s1550_s7, [#allocation4]  }
 0x2dc   :  { %1436 = dma.done.wait [#allocation4], 256  }
 0x2dd   :  { %1437 = vsyncadd [#allocation4], 4294967040 }
 0x2de   :  { %1002 = vsyncpa [#allocation3], 1 }
 0x2df   :  { %1003 = vsyncpa [#allocation6], 1 }
 0x2e0   :  { %1004 = vsyncpa [#allocation9], 1 }
 0x2e1   :  { %1005 = vsyncpa [#allocation4], 1 }

</bundles_post_ra>
